<compile_context>
chip_gen: v6e
topology: v6e:2x2x1
jax: 0.10.0
libtpu: 0.0.40
codegen_flags: <defaults>
</compile_context>

<pallas_src>
import functools
import math

import jax
import jax.numpy as jnp
from jax.experimental import pallas as pl
from jax.experimental.pallas import tpu as pltpu


def _actor_kernel(x_ref, wt_ref, b_ref, o_ref, *, max_action, action_dim):
    # x_ref : [TB, D]      (VMEM) input rows, compute dtype (bf16 or f32)
    # wt_ref: [D, A_pad]   (VMEM) pre-transposed, zero-padded weight (resident)
    # b_ref : [1, A_pad]   (VMEM) zero-padded bias, f32 (resident)
    # o_ref : [TB, A]      (VMEM) narrow (unpadded) output tile, f32
    z = jnp.dot(x_ref[...], wt_ref[...], preferred_element_type=jnp.float32)
    z = z + b_ref[...]                               # broadcast [1, A_pad], f32
    o_ref[...] = (max_action * jnp.tanh(z[:, :action_dim])).astype(o_ref.dtype)


def _round_up(n, m):
    return ((n + m - 1) // m) * m


def actor_forward(x, weight, bias, *, max_action, tile_b=4096,
                  input_dtype=jnp.bfloat16):
    """Actor forward: max_action * tanh(x @ weight.T + bias).

    x: [B, 128] f32; weight: [A, 128] f32 (PyTorch Linear layout); bias: [A] f32.
    """
    B, D = x.shape
    A = weight.shape[0]

    # Resident weight: transpose once to [D, A_pad] with the action dim padded
    # to a full 128-lane tile -> aligned MXU matmul, no in-kernel transpose.
    A_pad = 128 * pl.cdiv(A, 128)
    w_t = jnp.zeros((D, A_pad), input_dtype).at[:, :A].set(
        weight.T.astype(input_dtype))
    b_pad = jnp.zeros((1, A_pad), jnp.float32).at[0, :A].set(
        bias.astype(jnp.float32))
    x_in = x.astype(input_dtype)

    # Batch tile: large to amortize per-step pipeline overhead (HBM-bound op);
    # multiple of 8; for moderate B use ~B/2 so the grid has >= 2 steps and the
    # "parallel" axis shards across v7x's 2 TensorCores.
    if B <= 8:
        TB = B                       # full-array block (allowed even if B % 8 != 0)
    else:
        TB = min(tile_b, _round_up(pl.cdiv(B, 2), 8))
    grid = (pl.cdiv(B, TB),)

    kernel = functools.partial(_actor_kernel,
                               max_action=float(max_action), action_dim=A)
    out = pl.pallas_call(
        kernel,
        out_shape=jax.ShapeDtypeStruct((B, A), jnp.float32),
        grid=grid,
        in_specs=[
            pl.BlockSpec((TB, D), lambda i: (i, 0)),      # x: tiled over batch
            pl.BlockSpec((D, A_pad), lambda i: (0, 0)),   # weight: resident
            pl.BlockSpec((1, A_pad), lambda i: (0, 0)),   # bias: resident
        ],
        out_specs=pl.BlockSpec((TB, A), lambda i: (i, 0)),  # narrow, no padding
        compiler_params=pltpu.CompilerParams(
            dimension_semantics=("parallel",),               # megacore sharding
        ),
    )(x_in, w_t, b_pad)
    return out


def _xavier_uniform(key, shape, gain):
    # Matches torch.nn.init.xavier_uniform_ for a Linear weight [out, in].
    fan_out, fan_in = shape
    bound = gain * math.sqrt(6.0 / (fan_in + fan_out))
    return jax.random.uniform(key, shape, jnp.float32, -bound, bound)


if __name__ == "__main__":
    key = jax.random.PRNGKey(0)
    k_x, k_w, k_b = jax.random.split(key, 3)

    batch = 8
    in_features = 128
    action_dim = 4
    max_action = 2.0

    # leaky_relu gain with default negative_slope=0.01 (PyTorch calculate_gain)
    gain = math.sqrt(2.0 / (1.0 + 0.01 ** 2))

    x = jax.random.normal(k_x, (batch, in_features), jnp.float32)
    weight = _xavier_uniform(k_w, (action_dim, in_features), gain)
    # PyTorch Linear default bias init: U(-1/sqrt(fan_in), 1/sqrt(fan_in))
    b_bound = 1.0 / math.sqrt(in_features)
    bias = jax.random.uniform(k_b, (action_dim,), jnp.float32, -b_bound, b_bound)

    ref = max_action * jnp.tanh(x @ weight.T + bias)

    # Default (bf16-input) path, jitted so padding/transpose/cast fuse.
    actor = jax.jit(functools.partial(actor_forward, max_action=max_action))
    out = actor(x, weight, bias)
    jax.block_until_ready(out)
    assert out.shape == (batch, action_dim)
    assert jnp.allclose(out, ref, atol=5e-2, rtol=5e-2)

    # f32-input path: bit-tight numerical check of the kernel itself.
    actor_f32 = jax.jit(functools.partial(
        actor_forward, max_action=max_action, input_dtype=jnp.float32))
    out_f32 = actor_f32(x, weight, bias)
    jax.block_until_ready(out_f32)
    assert jnp.allclose(out_f32, ref, atol=1e-5, rtol=1e-5)

    print("KERNEL_OK")
</pallas_src>

<mosaic_0001>
module attributes {stable_mosaic.version = 11 : i64} {
  func.func @_actor_kernel(%arg0: i32, %arg1: memref<8x128xbf16, #tpu.memory_space<vmem>>, %arg2: memref<128x128xbf16, #tpu.memory_space<vmem>>, %arg3: memref<1x128xf32, #tpu.memory_space<vmem>>, %arg4: memref<8x4xf32, #tpu.memory_space<vmem>>) attributes {dimension_semantics = [#tpu.dimension_semantics<parallel>], iteration_bounds = array<i64: 1>, scalar_prefetch = 0 : i64, scratch_operands = 0 : i64, tpu.core_type = #tpu.core_type<tc>, window_params = [{transform_indices = @transform_0, window_bounds = array<i64: 8, 128>}, {pipeline_mode = #tpu.pipeline_mode<synchronous>, transform_indices = @transform_1, window_bounds = array<i64: 128, 128>}, {pipeline_mode = #tpu.pipeline_mode<synchronous>, transform_indices = @transform_2, window_bounds = array<i64: 1, 128>}, {transform_indices = @transform_3, window_bounds = array<i64: 8, 4>}]} {
    %c0 = arith.constant 0 : index
    %c0_0 = arith.constant 0 : index
    %0 = vector.load %arg1[%c0, %c0_0] : memref<8x128xbf16, #tpu.memory_space<vmem>>, vector<8x128xbf16>
    %c0_1 = arith.constant 0 : index
    %c0_2 = arith.constant 0 : index
    %1 = vector.load %arg2[%c0_1, %c0_2] : memref<128x128xbf16, #tpu.memory_space<vmem>>, vector<128x128xbf16>
    %cst = arith.constant dense<0.000000e+00> : vector<8x128xf32>
    %2 = tpu.matmul %0, %1, %cst {dimension_numbers = #tpu.dot_dimension_numbers<[1], [0], [0], [1], [0, 0, 1, 1], [], []>} : vector<8x128xbf16>, vector<128x128xbf16>, vector<8x128xf32> -> vector<8x128xf32>
    %c0_3 = arith.constant 0 : index
    %c0_4 = arith.constant 0 : index
    %3 = vector.load %arg3[%c0_3, %c0_4] : memref<1x128xf32, #tpu.memory_space<vmem>>, vector<1x128xf32>
    %4 = vector.broadcast %3 : vector<1x128xf32> to vector<8x128xf32>
    %5 = arith.addf %2, %4 : vector<8x128xf32>
    %6 = vector.extract_strided_slice %5 {offsets = [0, 0], sizes = [8, 4], strides = [1, 1]} : vector<8x128xf32> to vector<8x4xf32>
    %7 = math.tanh %6 : vector<8x4xf32>
    %cst_5 = arith.constant 2.000000e+00 : f32
    %8 = vector.broadcast %cst_5 : f32 to vector<8x4xf32>
    %9 = arith.mulf %8, %7 : vector<8x4xf32>
    %c0_6 = arith.constant 0 : index
    %c0_7 = arith.constant 0 : index
    %10 = vector.load %arg4[%c0_6, %c0_7] : memref<8x4xf32, #tpu.memory_space<vmem>>, vector<8x4xf32>
    tpu.vector_store %arg4[%c0_6, %c0_7], %9 {strides = array<i32>} : memref<8x4xf32, #tpu.memory_space<vmem>>, vector<8x4xf32>,
    return
  }
  func.func @transform_0(%arg0: i32) -> (i32, i32) {
    %c0_i32 = arith.constant 0 : i32
    %c0_i32_0 = arith.constant 0 : i32
    return %arg0, %c0_i32 : i32, i32
  }
  func.func @transform_1(%arg0: i32) -> (i32, i32) {
    %c0_i32 = arith.constant 0 : i32
    %c0_i32_0 = arith.constant 0 : i32
    %c0_i32_1 = arith.constant 0 : i32
    return %c0_i32, %c0_i32_0 : i32, i32
  }
  func.func @transform_2(%arg0: i32) -> (i32, i32) {
    %c0_i32 = arith.constant 0 : i32
    %c0_i32_0 = arith.constant 0 : i32
    %c0_i32_1 = arith.constant 0 : i32
    return %c0_i32, %c0_i32_0 : i32, i32
  }
  func.func @transform_3(%arg0: i32) -> (i32, i32) {
    %c0_i32 = arith.constant 0 : i32
    %c0_i32_0 = arith.constant 0 : i32
    return %arg0, %c0_i32 : i32, i32
  }
}

</mosaic_0001>

<bundles_post_ra>
// kernel: actor_forward.1
= control target key start
LH: loop header
LB: loop body
LE: loop exit
PB: predicated region body
PF: predicated region fallthrough
CT: control target
= control target key end

     0   :  { %v185_v0 = vmov 0.0   ;;  %vm186_vm0 = vmmov 0   ;;  %vm129_vm1 = vcmask 31744   ;;  %s240_s1 = inlined_call_operand.vmem [shape: bf16[128,128], index: 1, kind: input, shape index: {}]   ;;  %s241_s0 = inlined_call_operand.vmem [shape: bf16[8,128], index: 0, kind: input, shape index: {}]   ;;  %s242_s2 = inlined_call_operand.vmem [shape: f32[1,128], index: 2, kind: input, shape index: {}]   ;;  %s243_s3 = inlined_call_operand.vmem [shape: f32[8,4], index: 3, kind: output, shape index: {}]  }
   0x1   :  { %153 = vmatprep.subr.bf16.mxu0 %v185_v0  ;;  %v175_v1 = vld [vmem:[%s240_s1 + $0x38] sm:$0xff]   ;;  %169 = vmatprep.mubr.msk.bf16.mxu0 %vm186_vm0, %v185_v0  ;;  %v176_v2 = vld [vmem:[%s240_s1 + $0x30] sm:$0xff]   ;;  %v177_v3 = vld [vmem:[%s240_s1 + $0x28] sm:$0xff]  }
   0x2   :  { %154 = vmatpush3.bf16.msra.mxu0 %v175_v1  ;;  %v178_v4 = vld [vmem:[%s240_s1 + $0x20] sm:$0xff]   ;;  %v179_v5 = vld [vmem:[%s240_s1 + $0x18] sm:$0xff]   ;;  %v180_v6 = vld [vmem:[%s240_s1 + $0x10] sm:$0xff]  }
   0x3   :  { %155 = vmatprep.subr.bf16.mxu0 %v185_v0  ;;  %v181_v7 = vld [vmem:[%s240_s1 + $0x8] sm:$0xff]   ;;  %v182_v8 = vld [vmem:[%s240_s1] sm:$0xff]  }
   0x4   :  { %v15_v9 = vld [vmem:[%s241_s0] sm:$0xf] }
   0x5   :  { %v135_v10 = vld [vmem:[%s242_s2] ss:$0 sm:$0xff] }
   0x6   :  { %156 = vmatpush3.bf16.msra.mxu0 %v176_v2 }
   0x7   :  { %157 = vmatprep.subr.bf16.mxu0 %v185_v0 }
   0xa   :  { %158 = vmatpush3.bf16.msra.mxu0 %v177_v3 }
   0xb   :  { %159 = vmatprep.subr.bf16.mxu0 %v185_v0 }
   0xe   :  { %160 = vmatpush3.bf16.msra.mxu0 %v178_v4 }
   0xf   :  { %161 = vmatprep.subr.bf16.mxu0 %v185_v0 }
  0x12   :  { %162 = vmatpush3.bf16.msra.mxu0 %v179_v5 }
  0x13   :  { %163 = vmatprep.subr.bf16.mxu0 %v185_v0 }
  0x16   :  { %164 = vmatpush3.bf16.msra.mxu0 %v180_v6 }
  0x17   :  { %165 = vmatprep.subr.bf16.mxu0 %v185_v0 }
  0x1a   :  { %166 = vmatpush3.bf16.msra.mxu0 %v181_v7 }
  0x1b   :  { %167 = vmatprep.subr.bf16.mxu0 %v185_v0 }
  0x1e   :  { %168 = vmatpush3.bf16.msra.mxu0 %v182_v8 }
  0x21   :  { %170 = vmatmul.mubr.bf16.vlgmr.msra.gmra.mxu0 %v15_v9 }
  0xe1   :  { %v121_v11 = vpop.f32.mrf.mxu0 }
  0xe2   :  { %v122_v12 = vadd.f32 %v135_v10, %v121_v11 }
  0xe3   :  { %v171_v13 = vpop.f32.mrf.mxu0 }
  0xe4   :  { %183 = vtanh.f32 %v122_v12 }
  0xe5   :  { %v124_v14 = vpop.f32.mrf.mxu0 }
  0xe7   :  { %v172_v15 = vpop.f32.mrf.mxu0 }
  0xf1   :  { %v184_v16 = vpop.eup %183 }
  0xf2   :  { %v128_v17 = vmul.f32 2.0, %v184_v16 }
  0xf4   :  { %130 = vst.msk [vmem:[%s243_s3] sm:$0xff] %vm129_vm1, %v128_v17 }

</bundles_post_ra>
